<compile_context>
chip_gen: v5e
topology: v5e:2x2
jax: 0.10.0
libtpu: 0.0.40
codegen_flags: <defaults>
</compile_context>

<pallas_src>
import functools
import math

import jax
import jax.numpy as jnp
from jax.experimental import pallas as pl
from jax.experimental.pallas import tpu as pltpu


_INV_SQRT2 = 1.0 / math.sqrt(2.0)

# Conservative VMEM budget (bytes) for the fully-resident-weight variant.
# Sized for v7x (64 MiB physical per TC) with headroom for compiler scratch.
_RESIDENT_VMEM_BUDGET = 44 * 1024 * 1024
_VMEM_LIMIT_BYTES = 48 * 1024 * 1024


def _round_up(v, m):
    return ((v + m - 1) // m) * m


def _make_gelu(approximate):
    if approximate:
        # tanh-approx: transcendental goes to the EUP slot (free vs. VALU).
        return lambda h: jax.nn.gelu(h, approximate=True)
    # Exact erf (PyTorch F.gelu default). Heavier VALU polynomial; prefer on
    # v5e or when bit-exact-ish parity with torch matters.
    return lambda h: 0.5 * h * (1.0 + jax.lax.erf(h * _INV_SQRT2))


def _mlp_kernel_resident(x_ref, w1_ref, b1_ref, w2_ref, b2_ref, o_ref, *, act):
    # x_ref:  (tm, hidden)       input dtype (cast to bf16 here, in-kernel)
    # w1_ref: (hidden, mlp_dim)  bf16 (VMEM-resident)   b1_ref: (1, mlp_dim) f32
    # w2_ref: (mlp_dim, hidden)  bf16 (VMEM-resident)   b2_ref: (1, hidden)  f32
    # o_ref:  (tm, hidden)       output dtype
    x = x_ref[...].astype(w1_ref.dtype)
    h = jnp.dot(x, w1_ref[...], preferred_element_type=jnp.float32)
    h = act(h + b1_ref[...])
    out = jnp.dot(h.astype(w2_ref.dtype), w2_ref[...],
                  preferred_element_type=jnp.float32)
    o_ref[...] = (out + b2_ref[...]).astype(o_ref.dtype)


def _mlp_kernel_ksplit(x_ref, w1_ref, b1_ref, w2_ref, b2_ref, o_ref, acc_ref,
                       *, act):
    # Streaming fallback: reduction over mlp_dim chunks on grid axis 1.
    k = pl.program_id(1)

    x = x_ref[...].astype(w1_ref.dtype)
    h = jnp.dot(x, w1_ref[...], preferred_element_type=jnp.float32)
    h = act(h + b1_ref[...])
    partial = jnp.dot(h.astype(w2_ref.dtype), w2_ref[...],
                      preferred_element_type=jnp.float32)

    @pl.when(k == 0)
    def _assign():  # assign on first step: no zero-fill + add pass
        acc_ref[...] = partial

    @pl.when(k > 0)
    def _accum():
        acc_ref[...] += partial

    @pl.when(k == pl.num_programs(1) - 1)
    def _finalize():
        o_ref[...] = (acc_ref[...] + b2_ref[...]).astype(o_ref.dtype)


def mlp_forward(x, w1, b1, w2, b2, *, tile_m=512, compute_dtype=jnp.bfloat16,
                approximate_gelu=True, vmem_limit_bytes=_VMEM_LIMIT_BYTES):
    """x: (B, N, hidden). Returns (B, N, hidden).

    Weights are pre-transposed: w1 (hidden, mlp_dim), w2 (mlp_dim, hidden), so
    x @ w1 matches torch.nn.Linear(hidden, mlp_dim)(x). For best performance
    persist bf16 weights via prepare_mlp_params (the in-wrapper cast is then a
    no-op). Dropout is eval-mode identity.
    """
    # TODO(synk): training-mode dropout would need a pltpu.prng_* mask path.
    B, N, hidden = x.shape
    mlp_dim = w1.shape[1]
    M = B * N
    out_dtype = x.dtype

    # Row tile: 16-aligned (bf16 sublane packing). Cap so there are >= 2 row
    # tiles when M allows it (keeps both v7x TensorCores busy on the single
    # "parallel" axis). tile_m=512 clears the v7x roofline knee; v6e/v5e can
    # pass larger tile_m if desired (streaming path benefits most).
    tm_cap = _round_up(M, 16)
    if M > 32:
        tm_cap = min(tm_cap, _round_up(-(-M // 2), 16))
    tm = max(16, min(tile_m, tm_cap))
    num_row_tiles = pl.cdiv(M, tm)   # ragged last tile handled by masked writes

    x2d = x.reshape(M, hidden)       # cast to bf16 happens inside the kernel

    # Cast weights/biases only if the caller did not already prepare them.
    w1c = w1 if w1.dtype == compute_dtype else w1.astype(compute_dtype)
    w2c = w2 if w2.dtype == compute_dtype else w2.astype(compute_dtype)
    b1r = b1.reshape(1, mlp_dim)
    b1r = b1r if b1r.dtype == jnp.float32 else b1r.astype(jnp.float32)
    b2r = b2.reshape(1, hidden)
    b2r = b2r if b2r.dtype == jnp.float32 else b2r.astype(jnp.float32)

    act = _make_gelu(approximate_gelu)
    w_itemsize = jnp.dtype(compute_dtype).itemsize
    out_itemsize = jnp.dtype(out_dtype).itemsize

    # VMEM estimate for the resident variant: double-buffered weights + x/out
    # blocks + f32 intermediate (and its bf16 copy).
    weight_bytes = 2 * hidden * mlp_dim * w_itemsize
    resident_vmem = (2 * weight_bytes
                     + 2 * tm * hidden * x2d.dtype.itemsize
                     + 2 * tm * hidden * out_itemsize
                     + tm * mlp_dim * 6)
    use_resident = resident_vmem <= _RESIDENT_VMEM_BUDGET

    cost = pl.CostEstimate(
        flops=4 * M * hidden * mlp_dim,
        transcendentals=M * mlp_dim,
        bytes_accessed=(M * hidden * (x2d.dtype.itemsize + out_itemsize)
                        + 2 * hidden * mlp_dim * w_itemsize
                        + (mlp_dim + hidden) * 4),
    )

    if use_resident:
        kernel = functools.partial(_mlp_kernel_resident, act=act)
        # TODO(synk): pipeline_mode=pl.Buffered(1) on the four constant-index
        # operands would halve their VMEM footprint (matters most on v7x).
        grid_spec = pltpu.PrefetchScalarGridSpec(
            num_scalar_prefetch=0,
            grid=(num_row_tiles,),
            in_specs=[
                pl.BlockSpec((tm, hidden), lambda i: (i, 0)),        # x rows
                pl.BlockSpec((hidden, mlp_dim), lambda i: (0, 0)),   # W1 (resident)
                pl.BlockSpec((1, mlp_dim), lambda i: (0, 0)),        # b1
                pl.BlockSpec((mlp_dim, hidden), lambda i: (0, 0)),   # W2 (resident)
                pl.BlockSpec((1, hidden), lambda i: (0, 0)),         # b2
            ],
            out_specs=pl.BlockSpec((tm, hidden), lambda i: (i, 0)),
        )
        dim_sem = ("parallel",)
    else:
        # Streaming fallback: split mlp_dim; largest MXU-aligned chunk that
        # tiles it exactly (never rely on OOB reads along a reduction axis).
        tk = next((t for t in (1024, 512, 256, 128) if mlp_dim % t == 0), None)
        if tk is None:
            # TODO(synk): pad mlp_dim to a 128 multiple instead of a full pass.
            tk = mlp_dim
        kernel = functools.partial(_mlp_kernel_ksplit, act=act)
        grid_spec = pltpu.PrefetchScalarGridSpec(
            num_scalar_prefetch=0,
            grid=(num_row_tiles, mlp_dim // tk),
            in_specs=[
                pl.BlockSpec((tm, hidden), lambda i, k: (i, 0)),     # x rows
                pl.BlockSpec((hidden, tk), lambda i, k: (0, k)),     # W1 chunk
                pl.BlockSpec((1, tk), lambda i, k: (0, k)),          # b1 chunk
                pl.BlockSpec((tk, hidden), lambda i, k: (k, 0)),     # W2 chunk
                pl.BlockSpec((1, hidden), lambda i, k: (0, 0)),      # b2
            ],
            out_specs=pl.BlockSpec((tm, hidden), lambda i, k: (i, 0)),
            scratch_shapes=[pltpu.VMEM((tm, hidden), jnp.float32)],
        )
        dim_sem = ("parallel", "arbitrary")

    out2d = pl.pallas_call(
        kernel,
        out_shape=jax.ShapeDtypeStruct((M, hidden), out_dtype),
        grid_spec=grid_spec,
        compiler_params=pltpu.CompilerParams(
            dimension_semantics=dim_sem,
            vmem_limit_bytes=vmem_limit_bytes,
        ),
        cost_estimate=cost,
    )(x2d, w1c, b1r, w2c, b2r)

    return out2d.reshape(B, N, hidden)


def prepare_mlp_params(w1, b1, w2, b2, compute_dtype=jnp.bfloat16):
    """Persist kernel-ready params once, outside the per-call path."""
    return (w1.astype(compute_dtype), b1.astype(jnp.float32),
            w2.astype(compute_dtype), b2.astype(jnp.float32))


def init_mlp_params(key, hidden_size, mlp_dim, dtype=jnp.float32):
    """Deterministic init mirroring Mlp._init_weights (xavier_uniform + tiny bias)."""
    k1, k2, k3, k4 = jax.random.split(key, 4)
    bound1 = math.sqrt(6.0 / (hidden_size + mlp_dim))
    bound2 = math.sqrt(6.0 / (mlp_dim + hidden_size))
    w1 = jax.random.uniform(k1, (hidden_size, mlp_dim), dtype,
                            minval=-bound1, maxval=bound1)
    w2 = jax.random.uniform(k2, (mlp_dim, hidden_size), dtype,
                            minval=-bound2, maxval=bound2)
    b1 = (1e-6 * jax.random.normal(k3, (mlp_dim,))).astype(dtype)
    b2 = (1e-6 * jax.random.normal(k4, (hidden_size,))).astype(dtype)
    return w1, b1, w2, b2


if __name__ == "__main__":
    # Small config consistent with the transformer Mlp:
    #   batch=2, seq=8, hidden_size=32, mlp_dim=64
    B, N, hidden_size, mlp_dim = 2, 8, 32, 64

    key = jax.random.PRNGKey(0)
    kx, kp = jax.random.split(key)
    x = jax.random.normal(kx, (B, N, hidden_size), dtype=jnp.float32)
    w1, b1, w2, b2 = init_mlp_params(kp, hidden_size, mlp_dim)
    # Persist bf16 weights / f32 biases once (outside the per-call hot path).
    w1b, b1f, w2b, b2f = prepare_mlp_params(w1, b1, w2, b2)

    out = mlp_forward(x, w1b, b1f, w2b, b2f)
    out = jax.block_until_ready(out)
    assert out.shape == (B, N, hidden_size)

    # Precision-matched reference: same bf16 matmul inputs, f32 accumulation,
    # same tanh-approx GELU as the kernel default.
    x2d = x.reshape(-1, hidden_size).astype(jnp.bfloat16)
    h_ref = jax.nn.gelu(
        jnp.dot(x2d, w1b, preferred_element_type=jnp.float32) + b1f,
        approximate=True)
    ref = (jnp.dot(h_ref.astype(jnp.bfloat16), w2b,
                   preferred_element_type=jnp.float32) + b2f)
    ref = ref.reshape(B, N, hidden_size)
    assert jnp.allclose(out, ref, atol=5e-3, rtol=5e-3)

    # Loose sanity check vs. the full-f32 exact-erf (torch-style) reference
    # (bf16 rounding + tanh-approx GELU only).
    h_f32 = x.reshape(-1, hidden_size) @ w1 + b1
    ref_f32 = (0.5 * h_f32 * (1.0 + jax.lax.erf(h_f32 * _INV_SQRT2))) @ w2 + b2
    ref_f32 = ref_f32.reshape(B, N, hidden_size)
    assert jnp.allclose(out, ref_f32, atol=5e-2, rtol=5e-2)

    print("KERNEL_OK")
</pallas_src>

<mosaic_0001>
module attributes {stable_mosaic.version = 11 : i64} {
  func.func @_mlp_kernel_resident(%arg0: i32, %arg1: memref<16x32xf32, #tpu.memory_space<vmem>>, %arg2: memref<32x64xbf16, #tpu.memory_space<vmem>>, %arg3: memref<1x64xf32, #tpu.memory_space<vmem>>, %arg4: memref<64x32xbf16, #tpu.memory_space<vmem>>, %arg5: memref<1x32xf32, #tpu.memory_space<vmem>>, %arg6: memref<16x32xf32, #tpu.memory_space<vmem>>) attributes {dimension_semantics = [#tpu.dimension_semantics<parallel>], iteration_bounds = array<i64: 1>, scalar_prefetch = 0 : i64, scratch_operands = 0 : i64, tpu.core_type = #tpu.core_type<tc>, window_params = [{transform_indices = @transform_0, window_bounds = array<i64: 16, 32>}, {pipeline_mode = #tpu.pipeline_mode<synchronous>, transform_indices = @transform_1, window_bounds = array<i64: 32, 64>}, {pipeline_mode = #tpu.pipeline_mode<synchronous>, transform_indices = @transform_2, window_bounds = array<i64: 1, 64>}, {pipeline_mode = #tpu.pipeline_mode<synchronous>, transform_indices = @transform_3, window_bounds = array<i64: 64, 32>}, {pipeline_mode = #tpu.pipeline_mode<synchronous>, transform_indices = @transform_4, window_bounds = array<i64: 1, 32>}, {transform_indices = @transform_5, window_bounds = array<i64: 16, 32>}]} {
    %c0 = arith.constant 0 : index
    %c0_0 = arith.constant 0 : index
    %0 = vector.load %arg1[%c0, %c0_0] : memref<16x32xf32, #tpu.memory_space<vmem>>, vector<16x32xf32>
    %1 = arith.truncf %0 : vector<16x32xf32> to vector<16x32xbf16>
    %c0_1 = arith.constant 0 : index
    %c0_2 = arith.constant 0 : index
    %2 = vector.load %arg2[%c0_1, %c0_2] : memref<32x64xbf16, #tpu.memory_space<vmem>>, vector<32x64xbf16>
    %cst = arith.constant dense<0.000000e+00> : vector<16x64xf32>
    %3 = tpu.matmul %1, %2, %cst {dimension_numbers = #tpu.dot_dimension_numbers<[1], [0], [0], [1], [0, 0, 1, 1], [], []>} : vector<16x32xbf16>, vector<32x64xbf16>, vector<16x64xf32> -> vector<16x64xf32>
    %c0_3 = arith.constant 0 : index
    %c0_4 = arith.constant 0 : index
    %4 = vector.load %arg3[%c0_3, %c0_4] : memref<1x64xf32, #tpu.memory_space<vmem>>, vector<1x64xf32>
    %5 = vector.broadcast %4 : vector<1x64xf32> to vector<16x64xf32>
    %6 = arith.addf %3, %5 : vector<16x64xf32>
    %7 = arith.mulf %6, %6 : vector<16x64xf32>
    %8 = arith.mulf %6, %7 : vector<16x64xf32>
    %cst_5 = arith.constant 4.471500e-02 : f32
    %9 = vector.broadcast %cst_5 : f32 to vector<16x64xf32>
    %10 = arith.mulf %9, %8 : vector<16x64xf32>
    %11 = arith.addf %6, %10 : vector<16x64xf32>
    %cst_6 = arith.constant 0.797884583 : f32
    %12 = vector.broadcast %cst_6 : f32 to vector<16x64xf32>
    %13 = arith.mulf %12, %11 : vector<16x64xf32>
    %14 = math.tanh %13 : vector<16x64xf32>
    %cst_7 = arith.constant 1.000000e+00 : f32
    %15 = vector.broadcast %cst_7 : f32 to vector<16x64xf32>
    %16 = arith.addf %15, %14 : vector<16x64xf32>
    %cst_8 = arith.constant 5.000000e-01 : f32
    %17 = vector.broadcast %cst_8 : f32 to vector<16x64xf32>
    %18 = arith.mulf %17, %16 : vector<16x64xf32>
    %19 = arith.mulf %6, %18 : vector<16x64xf32>
    %20 = arith.truncf %19 : vector<16x64xf32> to vector<16x64xbf16>
    %c0_9 = arith.constant 0 : index
    %c0_10 = arith.constant 0 : index
    %21 = vector.load %arg4[%c0_9, %c0_10] : memref<64x32xbf16, #tpu.memory_space<vmem>>, vector<64x32xbf16>
    %cst_11 = arith.constant dense<0.000000e+00> : vector<16x32xf32>
    %22 = tpu.matmul %20, %21, %cst_11 {dimension_numbers = #tpu.dot_dimension_numbers<[1], [0], [0], [1], [0, 0, 1, 1], [], []>} : vector<16x64xbf16>, vector<64x32xbf16>, vector<16x32xf32> -> vector<16x32xf32>
    %c0_12 = arith.constant 0 : index
    %c0_13 = arith.constant 0 : index
    %23 = vector.load %arg5[%c0_12, %c0_13] : memref<1x32xf32, #tpu.memory_space<vmem>>, vector<1x32xf32>
    %24 = vector.broadcast %23 : vector<1x32xf32> to vector<16x32xf32>
    %25 = arith.addf %22, %24 : vector<16x32xf32>
    %c0_14 = arith.constant 0 : index
    %c0_15 = arith.constant 0 : index
    %26 = vector.load %arg6[%c0_14, %c0_15] : memref<16x32xf32, #tpu.memory_space<vmem>>, vector<16x32xf32>
    tpu.vector_store %arg6[%c0_14, %c0_15], %25 {strides = array<i32>} : memref<16x32xf32, #tpu.memory_space<vmem>>, vector<16x32xf32>,
    return
  }
  func.func @transform_0(%arg0: i32) -> (i32, i32) {
    %c0_i32 = arith.constant 0 : i32
    %c0_i32_0 = arith.constant 0 : i32
    return %arg0, %c0_i32 : i32, i32
  }
  func.func @transform_1(%arg0: i32) -> (i32, i32) {
    %c0_i32 = arith.constant 0 : i32
    %c0_i32_0 = arith.constant 0 : i32
    %c0_i32_1 = arith.constant 0 : i32
    return %c0_i32, %c0_i32_0 : i32, i32
  }
  func.func @transform_2(%arg0: i32) -> (i32, i32) {
    %c0_i32 = arith.constant 0 : i32
    %c0_i32_0 = arith.constant 0 : i32
    %c0_i32_1 = arith.constant 0 : i32
    return %c0_i32, %c0_i32_0 : i32, i32
  }
  func.func @transform_3(%arg0: i32) -> (i32, i32) {
    %c0_i32 = arith.constant 0 : i32
    %c0_i32_0 = arith.constant 0 : i32
    %c0_i32_1 = arith.constant 0 : i32
    return %c0_i32, %c0_i32_0 : i32, i32
  }
  func.func @transform_4(%arg0: i32) -> (i32, i32) {
    %c0_i32 = arith.constant 0 : i32
    %c0_i32_0 = arith.constant 0 : i32
    %c0_i32_1 = arith.constant 0 : i32
    return %c0_i32, %c0_i32_0 : i32, i32
  }
  func.func @transform_5(%arg0: i32) -> (i32, i32) {
    %c0_i32 = arith.constant 0 : i32
    %c0_i32_0 = arith.constant 0 : i32
    return %arg0, %c0_i32 : i32, i32
  }
}

</mosaic_0001>

<bundles_post_ra>
// kernel: tpu_custom_call.1
= control target key start
LH: loop header
LB: loop body
LE: loop exit
PB: predicated region body
PF: predicated region fallthrough
CT: control target
= control target key end

     0   :  { %s292_s0 = inlined_call_operand.vmem [shape: f32[16,32], index: 0, kind: input, shape index: {}]   ;;  %s293_s1 = inlined_call_operand.vmem [shape: bf16[32,64], index: 1, kind: input, shape index: {}]   ;;  %s294_s2 = inlined_call_operand.vmem [shape: f32[1,64], index: 2, kind: input, shape index: {}]   ;;  %s295_s3 = inlined_call_operand.vmem [shape: bf16[64,32], index: 3, kind: input, shape index: {}]   ;;  %s296_s4 = inlined_call_operand.vmem [shape: f32[1,32], index: 4, kind: input, shape index: {}]   ;;  %s297_s5 = inlined_call_operand.hbm [shape: f32[16,32], index: 5, kind: output, shape index: {}]  }
   0x1   :  { %v183_v0 = vld [vmem:[%s293_s1 + $0x8] sm:$0xff]  ;;  %v182_v1 = vld [vmem:[%s293_s1] sm:$0xff] }
   0x2   :  { %v22_v2 = vld [vmem:[%s292_s0] sm:$0xff]  ;;  %55 = vmatpush.bf16.msra.mxu0 %v183_v0  ;;  %v23_v3 = vld [vmem:[%s292_s0 + $0x8] sm:$0xff] }
   0x3   :  { %10 = vsyncpa [#allocation3], 0  ;;  %v24_v4 = vpack.c.bf16 %v23_v3, %v22_v2  ;;  %vm45_vm0 = vcmask 261120   ;;  %v187_v5 = vld [vmem:[%s295_s3 + $0x18] sm:$0xff]  ;;  %v186_v6 = vld [vmem:[%s295_s3 + $0x10] sm:$0xff]  ;;  %vm118_vm1 = vcmask 523264  }
   0x4   :  { %126 = vmatpush.bf16.msra.mxu1 %v187_v5  ;;  %v185_v7 = vld [vmem:[%s295_s3 + $0x8] sm:$0xff]  ;;  %v191_v8 = vld [vmem:[%s294_s2] ss:$0 sm:$0xff]  ;;  %s223_s9 = smov [#allocation2]   ;;  %s144_s13 = sshll.u32 %s297_s5, 4  ;;  %s145_s13 = int_to_ptr.hbm [resolvable:$true] %s144_s13 }
   0x5   :  { %v184_v9 = vld [vmem:[%s295_s3] sm:$0xff]  ;;  %s142_s10 = sshll.u32 %s223_s9, 4  ;;  %s224_s14 = smov 128   ;;  %s143_s10 = int_to_ptr.vmem [resolvable:$true] %s142_s10 }
   0x6   :  { %56 = vmatpush.bf16.msra.mxu0 %v182_v1  ;;  %v192_v33 = vld [vmem:[%s296_s4] ss:$0 sm:$0xff]  ;;  %s225_s15 = smov 8  }
   0x8   :  { %127 = vmatpush.bf16.msra.mxu1 %v186_v6 }
   0x9   :  { %164 = vmatmul.msk.bf16.vlgmr.msra.gmra.mxu0 %vm45_vm0, %v24_v4 }
   0xc   :  { %128 = vmatpush.bf16.msra.mxu1 %v185_v7 }
  0x10   :  { %129 = vmatpush.bf16.msra.mxu1 %v184_v9 }
  0x86   :  { %v58_v10 = vpop.f32.mrf.mxu0 }
  0x87   :  { %v59_v11 = vadd.f32 %v191_v8, %v58_v10 }
  0x89   :  { %v63_v12 = vmul.f32 %v59_v11, %v59_v11 }
  0x8b   :  { %v65_v13 = vmul.f32 %v63_v12, %v59_v11 }
  0x8d   :  { %v67_v14 = vmul.f32 0.044715, %v65_v13 }
  0x8e   :  { %v60_v15 = vpop.f32.mrf.mxu0 }
  0x8f   :  { %v69_v16 = vadd.f32 %v67_v14, %v59_v11  ;;  %v61_v17 = vadd.f32 %v191_v8, %v60_v15 }
  0x91   :  { %v71_v18 = vmul.f32 0.7978846, %v69_v16  ;;  %v64_v19 = vmul.f32 %v61_v17, %v61_v17 }
  0x93   :  { %v66_v20 = vmul.f32 %v64_v19, %v61_v17  ;;  %193 = vtanh.f32 %v71_v18 }
  0x95   :  { %v68_v21 = vmul.f32 0.044715, %v66_v20 }
  0x97   :  { %v70_v22 = vadd.f32 %v68_v21, %v61_v17 }
  0x99   :  { %v72_v23 = vmul.f32 0.7978846, %v70_v22  ;;  %v194_v24 = vpop.eup %193 }
  0x9a   :  { %v75_v25 = vadd.f32 1.0, %v194_v24 }
  0x9b   :  { %195 = vtanh.f32 %v72_v23 }
  0x9c   :  { %v77_v28 = vmul.f32 0.5, %v75_v25 }
  0x9e   :  { %v79_v30 = vmul.f32 %v77_v28, %v59_v11 }
  0xa1   :  { %v196_v26 = vpop.eup %195 }
  0xa2   :  { %v76_v27 = vadd.f32 1.0, %v196_v26 }
  0xa4   :  { %v78_v29 = vmul.f32 0.5, %v76_v27 }
  0xa6   :  { %v80_v31 = vmul.f32 %v78_v29, %v61_v17 }
  0xa8   :  { %v81_v32 = vpack.c.bf16 %v80_v31, %v79_v30 }
  0xaa   :  { %181 = vmatmul.msk.bf16.vlgmr.msra.gmra.mxu1 %vm118_vm1, %v81_v32 }
 0x127   :  { %v131_v34 = vpop.f32.mrf.mxu1 }
 0x128   :  { %v132_v35 = vadd.f32 %v192_v33, %v131_v34 }
 0x12a   :  { %136 = vst.msk [vmem:[#allocation2] sm:$0xff] %vm45_vm0, %v132_v35 }
 0x12f   :  { %v133_v36 = vpop.f32.mrf.mxu1 }
 0x130   :  { %v134_v37 = vadd.f32 %v192_v33, %v133_v36 }
 0x132   :  { %137 = vst.msk [vmem:[#allocation2 + $0x8] sm:$0xff] %vm45_vm0, %v134_v37 }
 0x133   :  { %150 = dma.vmem_to_hbm [thread:$0]  %s143_s10, 256, %s145_s13, [#allocation3], %s224_s14, %s224_s14, %s225_s15  }
 0x134   :  { %221 = dma.done.wait [#allocation3], 256  }
 0x135   :  { %222 = vsyncadd [#allocation3], 4294967040 }
 0x136   :  { %155 = vsyncpa [#allocation3], 1 }

</bundles_post_ra>
